<compile_context>
chip_gen: v5e
topology: v5e:2x2
jax: 0.10.0
libtpu: 0.0.40
codegen_flags: <defaults>
</compile_context>

<pallas_src>
import functools
import math

import jax
import jax.numpy as jnp
import numpy as np
from jax.experimental import pallas as pl
from jax.experimental.pallas import tpu as pltpu


_VMEM_LIMIT = 48 * 1024 * 1024        # explicit budget, v7x (64 MiB) safe
_P_RESIDENT_BYTES = 8 * 1024 * 1024   # keep P fully resident below this size


# ----------------------------------------------------------------------------
# Kernels
# ----------------------------------------------------------------------------
def project_kernel(x_ref, w_ref, o_ref):
    """P = X @ W with native bf16 operands, f32 accumulate, cast to output."""
    o_ref[...] = jnp.dot(x_ref[...], w_ref[...],
                         preferred_element_type=jnp.float32).astype(o_ref.dtype)


def spmm_epilogue_kernel(a_ref, p_ref, b_ref, o_ref, *scratch,
                         epilogue, f_out, tk, p_resident):
    """One (tm, tk) step of  O = epilogue(A_hat @ P + b).

    grid = (row tiles, K tiles).  If a scratch ref is given it is the f32
    accumulator (bf16 output layer); otherwise the f32 output tile itself
    accumulates (saves a VMEM round-trip per K step).
    """
    acc_ref = scratch[0] if scratch else o_ref
    k = pl.program_id(1)

    if p_resident:
        # P is fully VMEM-resident; slice the K-block out of it.
        start = pl.multiple_of(k * tk, tk)
        p_blk = p_ref[pl.ds(start, tk), :]
    else:
        p_blk = p_ref[...]

    part = jnp.dot(a_ref[...], p_blk, preferred_element_type=jnp.float32)

    @pl.when(k == 0)
    def _():
        acc_ref[...] = part

    @pl.when(k > 0)
    def _():
        acc_ref[...] += part

    @pl.when(k == pl.num_programs(1) - 1)
    def _():
        y = acc_ref[...] + b_ref[...]
        if epilogue == "relu":
            o_ref[...] = jnp.maximum(y, 0.0).astype(o_ref.dtype)
        else:  # masked log_softmax over the first f_out (real) lanes
            col = jax.lax.broadcasted_iota(jnp.int32, y.shape, 1)
            ym = jnp.where(col < f_out, y, -jnp.inf)   # padded lanes ignored
            m = jnp.max(ym, axis=1, keepdims=True)
            lse = jnp.log(jnp.sum(jnp.exp(ym - m), axis=1, keepdims=True))
            o_ref[...] = (y - m - lse).astype(o_ref.dtype)


# ----------------------------------------------------------------------------
# pallas_call wrappers
# ----------------------------------------------------------------------------
def _project(x, w, *, out_dtype, tm):
    n_pad, k_in = x.shape
    fp = w.shape[1]
    return pl.pallas_call(
        project_kernel,
        out_shape=jax.ShapeDtypeStruct((n_pad, fp), out_dtype),
        grid_spec=pltpu.PrefetchScalarGridSpec(
            num_scalar_prefetch=0,
            grid=(n_pad // tm,),
            in_specs=[
                pl.BlockSpec((tm, k_in), lambda i: (i, 0)),
                pl.BlockSpec((k_in, fp), lambda i: (0, 0)),
            ],
            out_specs=pl.BlockSpec((tm, fp), lambda i: (i, 0)),
        ),
        compiler_params=pltpu.CompilerParams(
            dimension_semantics=("parallel",),
            vmem_limit_bytes=_VMEM_LIMIT,
        ),
    )(x, w)


def _spmm(a_s, p, b, *, epilogue, f_out, out_dtype, tm, tk):
    n_pad = a_s.shape[0]
    fp = p.shape[1]

    # Resident P: constant block index -> loaded into VMEM exactly once.
    p_resident = (n_pad * fp * p.dtype.itemsize) <= _P_RESIDENT_BYTES
    if p_resident:
        p_spec = pl.BlockSpec((n_pad, fp), lambda i, k: (0, 0))
    else:
        p_spec = pl.BlockSpec((tk, fp), lambda i, k: (k, 0))

    # f32 output accumulates in place; bf16 output needs an f32 scratch.
    use_scratch = (jnp.dtype(out_dtype) != jnp.dtype(jnp.float32))
    scratch_shapes = [pltpu.VMEM((tm, fp), jnp.float32)] if use_scratch else []

    kernel = functools.partial(spmm_epilogue_kernel, epilogue=epilogue,
                               f_out=f_out, tk=tk, p_resident=p_resident)

    return pl.pallas_call(
        kernel,
        out_shape=jax.ShapeDtypeStruct((n_pad, fp), out_dtype),
        grid_spec=pltpu.PrefetchScalarGridSpec(
            num_scalar_prefetch=0,
            grid=(n_pad // tm, n_pad // tk),
            in_specs=[
                pl.BlockSpec((tm, tk), lambda i, k: (i, k)),   # A_hat tile (bf16)
                p_spec,                                        # projected features
                pl.BlockSpec((1, fp), lambda i, k: (0, 0)),    # bias (f32)
            ],
            out_specs=pl.BlockSpec((tm, fp), lambda i, k: (i, 0)),
            scratch_shapes=scratch_shapes,
        ),
        compiler_params=pltpu.CompilerParams(
            dimension_semantics=("parallel", "arbitrary"),
            vmem_limit_bytes=_VMEM_LIMIT,
        ),
    )(a_s, p, b)


# ----------------------------------------------------------------------------
# Plain-JAX glue
# ----------------------------------------------------------------------------
def build_normalized_adjacency(edge_index, num_nodes):
    """PyG gcn_norm: add self loops, symmetric D^{-1/2} (A+I) D^{-1/2}.

    Messages flow src -> dst, so A_hat[dst, src] = norm.  Duplicate edges
    scatter-add (PyG multigraph semantics); dedup edge_index if undesired.
    """
    src = jnp.concatenate([edge_index[0], jnp.arange(num_nodes)])
    dst = jnp.concatenate([edge_index[1], jnp.arange(num_nodes)])
    ones = jnp.ones(src.shape[0], dtype=jnp.float32)
    deg = jnp.zeros((num_nodes,), jnp.float32).at[dst].add(ones)
    dinv = jnp.where(deg > 0, 1.0 / jnp.sqrt(deg), 0.0)
    norm = dinv[src] * dinv[dst]
    return jnp.zeros((num_nodes, num_nodes), jnp.float32).at[dst, src].add(norm)


def _round_up(v, m):
    return ((v + m - 1) // m) * m


def _pad2d(a, rows, cols, dtype):
    a = jnp.asarray(a, dtype)
    return jnp.pad(a, ((0, rows - a.shape[0]), (0, cols - a.shape[1])))


def _choose_tiles(n, max_tile=1024):
    """Pick (n_pad, tm, tk): big tiles for roofline, >=2 row tiles when possible."""
    n_align = _round_up(max(n, 8), 256)
    tm = tk = min(max_tile, n_align)
    n_pad = _round_up(n, tm)
    # v7x has 2 TensorCores; the parallel row axis needs >=2 tiles to use both.
    if n_pad // tm < 2 and n_pad >= 512:
        tm = n_pad // 2            # still a multiple of 128, divides n_pad
    return n_pad, tm, tk


def gcn_forward(x, edge_index, w1, b1, w2, b2, *, a_dtype=jnp.bfloat16):
    """Full GCN forward. Returns log_softmax(logits) of shape (N, F_out)."""
    n, f_in = x.shape
    f_out = w1.shape[1]

    n_pad, tm, tk = _choose_tiles(n)
    fin_pad = _round_up(f_in, 128)
    fp = _round_up(f_out, 128)

    # Build A_hat in f32 at (N, N), cast to the streaming dtype BEFORE
    # padding: never materialize an n_pad^2 f32 copy.
    a_hat = build_normalized_adjacency(edge_index, n).astype(a_dtype)
    a_s = jnp.pad(a_hat, ((0, n_pad - n), (0, n_pad - n)))

    xp = _pad2d(x, n_pad, fin_pad, jnp.bfloat16)
    w1p = _pad2d(w1, fin_pad, fp, jnp.bfloat16)
    w2p = _pad2d(w2, fp, fp, jnp.bfloat16)
    b1p = _pad2d(jnp.reshape(b1, (1, -1)), 1, fp, jnp.float32)
    b2p = _pad2d(jnp.reshape(b2, (1, -1)), 1, fp, jnp.float32)

    # Projection row tile chosen independently of the SpMM tiles.
    tm_proj = n_pad if n_pad <= 2048 else 1024

    # Layer 1: h = ReLU(A_hat @ (X W1) + b1)
    p1 = _project(xp, w1p, out_dtype=jnp.bfloat16, tm=tm_proj)
    h = _spmm(a_s, p1, b1p, epilogue="relu", f_out=f_out,
              out_dtype=jnp.bfloat16, tm=tm, tk=tk)

    # Layer 2: y = A_hat @ (h W2) + b2 ; out = log_softmax(y)
    p2 = _project(h, w2p, out_dtype=jnp.bfloat16, tm=tm_proj)
    y = _spmm(a_s, p2, b2p, epilogue="log_softmax", f_out=f_out,
              out_dtype=jnp.float32, tm=tm, tk=tk)

    return y[:n, :f_out]


def reference_forward(x, edge_index, w1, b1, w2, b2, *, bf16=True):
    """Pure-JAX reference; bf16=True mirrors the kernel's rounding points."""
    def rnd(v):
        return v.astype(jnp.bfloat16).astype(jnp.float32) if bf16 else v

    a = rnd(build_normalized_adjacency(edge_index, x.shape[0]))
    p1 = rnd(rnd(x) @ rnd(w1))
    h = rnd(jnp.maximum(a @ p1 + jnp.reshape(b1, (1, -1)), 0.0))
    p2 = rnd(rnd(h) @ rnd(w2))
    y = a @ p2 + jnp.reshape(b2, (1, -1))
    return jax.nn.log_softmax(y, axis=1)


# ----------------------------------------------------------------------------
# Demo / self-check
# ----------------------------------------------------------------------------
if __name__ == "__main__":
    key = jax.random.PRNGKey(0)
    ks = jax.random.split(key, 10)

    # --- assignment graph: 5 nodes, 4 input features, 8 output channels ---
    edge_index = jnp.array(
        [[0, 0, 0, 0, 1, 1, 1, 2, 2, 3, 3, 4, 4],
         [1, 2, 3, 4, 0, 2, 4, 1, 3, 2, 4, 2, 1]], dtype=jnp.int32)
    x = jnp.array(
        [[1.0, 0.0, 0.0, 1.0],
         [1.0, 1.0, 0.0, 1.0],
         [1.0, 1.0, 1.0, 1.0],
         [1.0, 0.0, 0.0, 0.0],
         [0.0, 0.0, 0.0, 1.0]], dtype=jnp.float32)

    in_channels, out_channels = 4, 8
    w1 = jax.random.normal(ks[0], (in_channels, out_channels), jnp.float32) / np.sqrt(in_channels)
    w2 = jax.random.normal(ks[1], (out_channels, out_channels), jnp.float32) / np.sqrt(out_channels)
    b1 = 0.1 * jax.random.normal(ks[2], (1, out_channels), jnp.float32)
    b2 = 0.1 * jax.random.normal(ks[3], (1, out_channels), jnp.float32)

    out = jax.block_until_ready(gcn_forward(x, edge_index, w1, b1, w2, b2))

    ref_bf = reference_forward(x, edge_index, w1, b1, w2, b2, bf16=True)
    np.testing.assert_allclose(np.asarray(out), np.asarray(ref_bf), rtol=1e-3, atol=1e-3)
    # Loose check against the pure-f32 (exact PyG) math: bf16 streaming only
    # perturbs logits at the sub-percent level (stated precision contract).
    ref_f32 = reference_forward(x, edge_index, w1, b1, w2, b2, bf16=False)
    np.testing.assert_allclose(np.asarray(out), np.asarray(ref_f32), rtol=5e-2, atol=5e-2)

    # --- larger synthetic graph: exercises a multi-tile grid over A_hat ---
    n2, fin2, fout2, m2 = 600, 16, 8, 4000
    src = jax.random.randint(ks[4], (m2,), 0, n2, dtype=jnp.int32)
    dst = jax.random.randint(ks[5], (m2,), 0, n2, dtype=jnp.int32)
    ei2 = jnp.stack([src, dst])
    x2 = jax.random.normal(ks[6], (n2, fin2), jnp.float32)
    w1b = jax.random.normal(ks[7], (fin2, fout2), jnp.float32) / np.sqrt(fin2)
    w2b = jax.random.normal(ks[8], (fout2, fout2), jnp.float32) / np.sqrt(fout2)
    b1b = 0.1 * jax.random.normal(ks[9], (1, fout2), jnp.float32)
    b2b = jnp.zeros((1, fout2), jnp.float32)

    out2 = jax.block_until_ready(gcn_forward(x2, ei2, w1b, b1b, w2b, b2b))
    ref2 = reference_forward(x2, ei2, w1b, b1b, w2b, b2b, bf16=True)
    np.testing.assert_allclose(np.asarray(out2), np.asarray(ref2), rtol=1e-3, atol=1e-3)

    print("KERNEL_OK")
</pallas_src>

<mosaic_0001>
module attributes {stable_mosaic.version = 11 : i64} {
  func.func @project_kernel(%arg0: i32, %arg1: memref<256x128xbf16, #tpu.memory_space<vmem>>, %arg2: memref<128x128xbf16, #tpu.memory_space<vmem>>, %arg3: memref<256x128xbf16, #tpu.memory_space<vmem>>) attributes {dimension_semantics = [#tpu.dimension_semantics<parallel>], iteration_bounds = array<i64: 1>, scalar_prefetch = 0 : i64, scratch_operands = 0 : i64, tpu.core_type = #tpu.core_type<tc>, window_params = [{transform_indices = @transform_0, window_bounds = array<i64: 256, 128>}, {pipeline_mode = #tpu.pipeline_mode<synchronous>, transform_indices = @transform_1, window_bounds = array<i64: 128, 128>}, {transform_indices = @transform_2, window_bounds = array<i64: 256, 128>}]} {
    %c0 = arith.constant 0 : index
    %c0_0 = arith.constant 0 : index
    %0 = vector.load %arg1[%c0, %c0_0] : memref<256x128xbf16, #tpu.memory_space<vmem>>, vector<256x128xbf16>
    %c0_1 = arith.constant 0 : index
    %c0_2 = arith.constant 0 : index
    %1 = vector.load %arg2[%c0_1, %c0_2] : memref<128x128xbf16, #tpu.memory_space<vmem>>, vector<128x128xbf16>
    %cst = arith.constant dense<0.000000e+00> : vector<256x128xf32>
    %2 = tpu.matmul %0, %1, %cst {dimension_numbers = #tpu.dot_dimension_numbers<[1], [0], [0], [1], [0, 0, 1, 1], [], []>} : vector<256x128xbf16>, vector<128x128xbf16>, vector<256x128xf32> -> vector<256x128xf32>
    %3 = arith.truncf %2 : vector<256x128xf32> to vector<256x128xbf16>
    %c0_3 = arith.constant 0 : index
    %c0_4 = arith.constant 0 : index
    %4 = vector.load %arg3[%c0_3, %c0_4] : memref<256x128xbf16, #tpu.memory_space<vmem>>, vector<256x128xbf16>
    tpu.vector_store %arg3[%c0_3, %c0_4], %3 {strides = array<i32>} : memref<256x128xbf16, #tpu.memory_space<vmem>>, vector<256x128xbf16>,
    return
  }
  func.func @transform_0(%arg0: i32) -> (i32, i32) {
    %c0_i32 = arith.constant 0 : i32
    %c0_i32_0 = arith.constant 0 : i32
    return %arg0, %c0_i32 : i32, i32
  }
  func.func @transform_1(%arg0: i32) -> (i32, i32) {
    %c0_i32 = arith.constant 0 : i32
    %c0_i32_0 = arith.constant 0 : i32
    %c0_i32_1 = arith.constant 0 : i32
    return %c0_i32, %c0_i32_0 : i32, i32
  }
  func.func @transform_2(%arg0: i32) -> (i32, i32) {
    %c0_i32 = arith.constant 0 : i32
    %c0_i32_0 = arith.constant 0 : i32
    return %arg0, %c0_i32 : i32, i32
  }
}

</mosaic_0001>

<bundles_post_ra>
// kernel: tpu_custom_call.1
= control target key start
LH: loop header
LB: loop body
LE: loop exit
PB: predicated region body
PF: predicated region fallthrough
CT: control target
= control target key end

     0   :  { %7 = vsyncpa [#allocation3], 0  ;;  %s769_s0 = inlined_call_operand.hbm [shape: bf16[256,128], index: 0, kind: input, shape index: {}]   ;;  %s770_s1 = inlined_call_operand.hbm [shape: bf16[128,128], index: 1, kind: input, shape index: {}]   ;;  %s771_s2 = inlined_call_operand.hbm [shape: bf16[256,128], index: 2, kind: output, shape index: {}]  }
   0x1   :  { %8 = vsyncpa [#allocation6], 0 }
   0x2   :  { %9 = vsyncpa [#allocation4], 0  ;;  %s14_s11 = sshll.u32 %s769_s0, 4  ;;  %s731_s12 = smov [#allocation2]   ;;  %s15_s11 = int_to_ptr.hbm [resolvable:$true] %s14_s11 }
   0x3   :  { %s16_s13 = sshll.u32 %s731_s12, 4  ;;  %s27_s16 = sshll.u32 %s770_s1, 4  ;;  %s17_s13 = int_to_ptr.vmem [resolvable:$true] %s16_s13  ;;  %s28_s16 = int_to_ptr.hbm [resolvable:$true] %s27_s16 }
   0x4   :  { %s732_s17 = smov 64   ;;  %s733_s18 = smov 4  }
   0x5   :  { %22 = dma.hbm_to_vmem [thread:$0]  %s15_s11, 2048, %s17_s13, [#allocation3], %s732_s17, %s732_s17, %s733_s18  }
   0x6   :  { %s734_s19 = smov [#allocation5]  }
   0x7   :  { %s29_s20 = sshll.u32 %s734_s19, 4  ;;  %s30_s20 = int_to_ptr.vmem [resolvable:$true] %s29_s20 }
   0x8   :  { %35 = dma.hbm_to_vmem [thread:$0]  %s28_s16, 1024, %s30_s20, [#allocation6], %s732_s17, %s732_s17, %s733_s18  }
   0x9   :  { %725 = dma.done.wait [#allocation3], 2048  }
   0xa   :  { %726 = vsyncadd [#allocation3], 4294965248 }
   0xb   :  { %727 = dma.done.wait [#allocation6], 1024  }
   0xc   :  { %728 = vsyncadd [#allocation6], 4294966272  ;;  %v528_v0 = vld [vmem:[#allocation5 + $0x38] sm:$0xff]  ;;  %v527_v1 = vld [vmem:[#allocation5 + $0x30] sm:$0xff]  ;;  %s735_s0 = smov [#allocation7]   ;;  %s395_s23 = sshll.u32 %s771_s2, 4  ;;  %s396_s23 = int_to_ptr.hbm [resolvable:$true] %s395_s23 }
   0xd   :  { %236 = vmatpush.bf16.msra.mxu0 %v528_v0  ;;  %624 = vmatpush.bf16.msra.mxu1 %v528_v0  ;;  %v526_v2 = vld [vmem:[#allocation5 + $0x28] sm:$0xff]  ;;  %v525_v3 = vld [vmem:[#allocation5 + $0x20] sm:$0xff]  ;;  %v524_v4 = vld [vmem:[#allocation5 + $0x18] sm:$0xff]  ;;  %s393_s1 = sshll.u32 %s735_s0, 4  ;;  %s394_s1 = int_to_ptr.vmem [resolvable:$true] %s393_s1 }
   0xe   :  { %625 = vmatpush.bf16.msra.mxu2 %v528_v0  ;;  %626 = vmatpush.bf16.msra.mxu3 %v528_v0  ;;  %v523_v5 = vld [vmem:[#allocation5 + $0x10] sm:$0xff]  ;;  %v522_v6 = vld [vmem:[#allocation5 + $0x8] sm:$0xff]  ;;  %v521_v7 = vld [vmem:[#allocation5] sm:$0xff] }
   0xf   :  { %v505_v8 = vld [vmem:[#allocation2] sm:$0xff]  ;;  %v506_v12 = vld [vmem:[#allocation2 + $0x8] sm:$0xff]  ;;  %v507_v16 = vld [vmem:[#allocation2 + $0x10] sm:$0xff] }
  0x10   :  { %v509_v9 = vld [vmem:[#allocation2 + $0x20] sm:$0xff]  ;;  %v510_v13 = vld [vmem:[#allocation2 + $0x28] sm:$0xff]  ;;  %v511_v17 = vld [vmem:[#allocation2 + $0x30] sm:$0xff] }
  0x11   :  { %237 = vmatpush.bf16.msra.mxu0 %v527_v1  ;;  %627 = vmatpush.bf16.msra.mxu1 %v527_v1  ;;  %v513_v10 = vld [vmem:[#allocation2 + $0x40] sm:$0xff]  ;;  %v514_v14 = vld [vmem:[#allocation2 + $0x48] sm:$0xff]  ;;  %v515_v18 = vld [vmem:[#allocation2 + $0x50] sm:$0xff] }
  0x12   :  { %628 = vmatpush.bf16.msra.mxu2 %v527_v1  ;;  %629 = vmatpush.bf16.msra.mxu3 %v527_v1  ;;  %v517_v11 = vld [vmem:[#allocation2 + $0x60] sm:$0xff]  ;;  %v518_v15 = vld [vmem:[#allocation2 + $0x68] sm:$0xff]  ;;  %v519_v19 = vld [vmem:[#allocation2 + $0x70] sm:$0xff] }
  0x13   :  { %v508_v20 = vld [vmem:[#allocation2 + $0x18] sm:$0xff] }
  0x14   :  { %v512_v21 = vld [vmem:[#allocation2 + $0x38] sm:$0xff] }
  0x15   :  { %238 = vmatpush.bf16.msra.mxu0 %v526_v2  ;;  %630 = vmatpush.bf16.msra.mxu1 %v526_v2  ;;  %v516_v22 = vld [vmem:[#allocation2 + $0x58] sm:$0xff] }
  0x16   :  { %631 = vmatpush.bf16.msra.mxu2 %v526_v2  ;;  %632 = vmatpush.bf16.msra.mxu3 %v526_v2  ;;  %v520_v23 = vld [vmem:[#allocation2 + $0x78] sm:$0xff] }
  0x19   :  { %239 = vmatpush.bf16.msra.mxu0 %v525_v3  ;;  %633 = vmatpush.bf16.msra.mxu1 %v525_v3 }
  0x1a   :  { %634 = vmatpush.bf16.msra.mxu2 %v525_v3  ;;  %635 = vmatpush.bf16.msra.mxu3 %v525_v3 }
  0x1d   :  { %240 = vmatpush.bf16.msra.mxu0 %v524_v4  ;;  %636 = vmatpush.bf16.msra.mxu1 %v524_v4 }
  0x1e   :  { %637 = vmatpush.bf16.msra.mxu2 %v524_v4  ;;  %638 = vmatpush.bf16.msra.mxu3 %v524_v4 }
  0x21   :  { %241 = vmatpush.bf16.msra.mxu0 %v523_v5  ;;  %639 = vmatpush.bf16.msra.mxu1 %v523_v5 }
  0x22   :  { %640 = vmatpush.bf16.msra.mxu2 %v523_v5  ;;  %641 = vmatpush.bf16.msra.mxu3 %v523_v5 }
  0x25   :  { %242 = vmatpush.bf16.msra.mxu0 %v522_v6  ;;  %642 = vmatpush.bf16.msra.mxu1 %v522_v6 }
  0x26   :  { %643 = vmatpush.bf16.msra.mxu2 %v522_v6  ;;  %644 = vmatpush.bf16.msra.mxu3 %v522_v6 }
  0x29   :  { %243 = vmatpush.bf16.msra.mxu0 %v521_v7  ;;  %645 = vmatpush.bf16.msra.mxu1 %v521_v7 }
  0x2a   :  { %646 = vmatpush.bf16.msra.mxu2 %v521_v7  ;;  %647 = vmatpush.bf16.msra.mxu3 %v521_v7 }
  0x2c   :  { %244 = vmatmul.bf16.vlgmr.msra.gmra.mxu0 %v505_v8  ;;  %264 = vmatmul.bf16.vlgmr.msra.gmra.mxu1 %v509_v9 }
  0x2d   :  { %284 = vmatmul.bf16.vlgmr.msra.gmra.mxu2 %v513_v10  ;;  %304 = vmatmul.bf16.vlgmr.msra.gmra.mxu3 %v517_v11 }
  0x3c   :  { %249 = vmatmul.bf16.gmra.mxu0 %v506_v12  ;;  %269 = vmatmul.bf16.gmra.mxu1 %v510_v13 }
  0x3d   :  { %289 = vmatmul.bf16.gmra.mxu2 %v514_v14  ;;  %309 = vmatmul.bf16.gmra.mxu3 %v518_v15 }
  0x4c   :  { %254 = vmatmul.bf16.gmra.mxu0 %v507_v16  ;;  %274 = vmatmul.bf16.gmra.mxu1 %v511_v17 }
  0x4d   :  { %294 = vmatmul.bf16.gmra.mxu2 %v515_v18  ;;  %314 = vmatmul.bf16.gmra.mxu3 %v519_v19 }
  0x5c   :  { %259 = vmatmul.bf16.gmra.mxu0 %v508_v20  ;;  %279 = vmatmul.bf16.gmra.mxu1 %v512_v21 }
  0x5d   :  { %299 = vmatmul.bf16.gmra.mxu2 %v516_v22  ;;  %319 = vmatmul.bf16.gmra.mxu3 %v520_v23 }
  0xa9   :  { %v245_v24 = vpop.f32.mrf.mxu0  ;;  %v265_v25 = vpop.f32.mrf.mxu1 }
  0xb0   :  { %v285_v26 = vpop.f32.mrf.mxu2  ;;  %v305_v27 = vpop.f32.mrf.mxu3 }
  0xb1   :  { %v247_v28 = vpop.f32.mrf.mxu0  ;;  %v267_v29 = vpop.f32.mrf.mxu1 }
  0xb2   :  { %v532_v30 = vpack.c.bf16 %v247_v28, %v245_v24  ;;  %v552_v31 = vpack.c.bf16 %v267_v29, %v265_v25 }
  0xb4   :  { %533 = vst [vmem:[#allocation7] sm:$0xff] %v532_v30  }
  0xb5   :  { %612 = vst [vmem:[#allocation7 + $0x20] sm:$0xff] %v552_v31  }
  0xb8   :  { %v287_v32 = vpop.f32.mrf.mxu2  ;;  %v307_v33 = vpop.f32.mrf.mxu3 }
  0xb9   :  { %v572_v34 = vpack.c.bf16 %v287_v32, %v285_v26  ;;  %v592_v35 = vpack.c.bf16 %v307_v33, %v305_v27  ;;  %v250_v36 = vpop.f32.mrf.mxu0  ;;  %v270_v37 = vpop.f32.mrf.mxu1 }
  0xbb   :  { %616 = vst [vmem:[#allocation7 + $0x40] sm:$0xff] %v572_v34  }
  0xbc   :  { %620 = vst [vmem:[#allocation7 + $0x60] sm:$0xff] %v592_v35  }
  0xc0   :  { %v290_v38 = vpop.f32.mrf.mxu2  ;;  %v310_v39 = vpop.f32.mrf.mxu3 }
  0xc1   :  { %v252_v40 = vpop.f32.mrf.mxu0  ;;  %v272_v41 = vpop.f32.mrf.mxu1 }
  0xc2   :  { %v537_v42 = vpack.c.bf16 %v252_v40, %v250_v36  ;;  %v557_v43 = vpack.c.bf16 %v272_v41, %v270_v37 }
  0xc4   :  { %609 = vst [vmem:[#allocation7 + $0x8] sm:$0xff] %v537_v42  }
  0xc5   :  { %613 = vst [vmem:[#allocation7 + $0x28] sm:$0xff] %v557_v43  }
  0xc8   :  { %v292_v44 = vpop.f32.mrf.mxu2  ;;  %v312_v45 = vpop.f32.mrf.mxu3 }
  0xc9   :  { %v577_v46 = vpack.c.bf16 %v292_v44, %v290_v38  ;;  %v597_v47 = vpack.c.bf16 %v312_v45, %v310_v39  ;;  %v255_v48 = vpop.f32.mrf.mxu0  ;;  %v275_v49 = vpop.f32.mrf.mxu1 }
  0xcb   :  { %617 = vst [vmem:[#allocation7 + $0x48] sm:$0xff] %v577_v46  }
  0xcc   :  { %621 = vst [vmem:[#allocation7 + $0x68] sm:$0xff] %v597_v47  }
  0xd0   :  { %v295_v50 = vpop.f32.mrf.mxu2  ;;  %v315_v51 = vpop.f32.mrf.mxu3 }
  0xd1   :  { %v257_v52 = vpop.f32.mrf.mxu0  ;;  %v277_v53 = vpop.f32.mrf.mxu1 }
  0xd2   :  { %v542_v54 = vpack.c.bf16 %v257_v52, %v255_v48  ;;  %v562_v55 = vpack.c.bf16 %v277_v53, %v275_v49 }
  0xd4   :  { %610 = vst [vmem:[#allocation7 + $0x10] sm:$0xff] %v542_v54  }
  0xd5   :  { %614 = vst [vmem:[#allocation7 + $0x30] sm:$0xff] %v562_v55  }
  0xd8   :  { %v297_v56 = vpop.f32.mrf.mxu2  ;;  %v317_v57 = vpop.f32.mrf.mxu3 }
  0xd9   :  { %v582_v58 = vpack.c.bf16 %v297_v56, %v295_v50  ;;  %v602_v59 = vpack.c.bf16 %v317_v57, %v315_v51  ;;  %v260_v60 = vpop.f32.mrf.mxu0  ;;  %v280_v61 = vpop.f32.mrf.mxu1 }
  0xdb   :  { %618 = vst [vmem:[#allocation7 + $0x50] sm:$0xff] %v582_v58  }
  0xdc   :  { %622 = vst [vmem:[#allocation7 + $0x70] sm:$0xff] %v602_v59  }
  0xe0   :  { %v300_v62 = vpop.f32.mrf.mxu2  ;;  %v320_v63 = vpop.f32.mrf.mxu3 }
  0xe1   :  { %v262_v0 = vpop.f32.mrf.mxu0  ;;  %v282_v1 = vpop.f32.mrf.mxu1 }
  0xe2   :  { %v547_v2 = vpack.c.bf16 %v262_v0, %v260_v60  ;;  %v567_v3 = vpack.c.bf16 %v282_v1, %v280_v61 }
  0xe4   :  { %611 = vst [vmem:[#allocation7 + $0x18] sm:$0xff] %v547_v2  }
  0xe5   :  { %615 = vst [vmem:[#allocation7 + $0x38] sm:$0xff] %v567_v3  }
  0xe8   :  { %v302_v4 = vpop.f32.mrf.mxu2  ;;  %v322_v5 = vpop.f32.mrf.mxu3 }
  0xe9   :  { %v587_v6 = vpack.c.bf16 %v302_v4, %v300_v62  ;;  %v607_v7 = vpack.c.bf16 %v322_v5, %v320_v63 }
  0xeb   :  { %619 = vst [vmem:[#allocation7 + $0x58] sm:$0xff] %v587_v6  }
  0xec   :  { %623 = vst [vmem:[#allocation7 + $0x78] sm:$0xff] %v607_v7  }
  0xed   :  { %401 = dma.vmem_to_hbm [thread:$0]  %s394_s1, 2048, %s396_s23, [#allocation4], %s732_s17, %s732_s17, %s733_s18  }
  0xee   :  { %729 = dma.done.wait [#allocation4], 2048  }
  0xef   :  { %730 = vsyncadd [#allocation4], 4294965248 }
  0xf0   :  { %406 = vsyncpa [#allocation3], 1 }
  0xf1   :  { %407 = vsyncpa [#allocation6], 1 }
  0xf2   :  { %408 = vsyncpa [#allocation4], 1 }

</bundles_post_ra>
